<compile_context>
chip_gen: v5e
topology: v5e:2x2
jax: 0.10.0
libtpu: 0.0.40
codegen_flags: <defaults>
</compile_context>

<pallas_src>
import functools

import jax
import jax.numpy as jnp
from jax.experimental import pallas as pl
from jax.experimental.pallas import tpu as pltpu


def _round_up(x: int, m: int) -> int:
    return ((x + m - 1) // m) * m


def _fused_mlp_kernel(x_ref, w_ref, b_ref, o_ref, h0, h1, *, relu_flags):
    # x_ref: [Bt, D]        (compute dtype, zero-padded features)
    # w_ref: [L, D, D]      (pre-transposed [in, out], zero-padded)
    # b_ref: [L, 1, D]      (zero-padded)
    # o_ref: [Bt, D]        (output dtype)
    # h0/h1: [Bt, D] f32 VMEM scratch — ping-pong activation buffers.
    bufs = (h0, h1)
    h0[...] = x_ref[...].astype(jnp.float32)
    src = 0
    for l, relu in enumerate(relu_flags):          # static unrolled layer loop
        a = bufs[src][...].astype(w_ref.dtype)     # back to compute dtype for MXU
        y = jnp.dot(a, w_ref[l], preferred_element_type=jnp.float32)
        y = y + b_ref[l].astype(jnp.float32)       # bias broadcast over batch (f32)
        if relu:                                   # nn.ReLU(True) after all but last
            y = jnp.maximum(y, 0.0)
        src = 1 - src
        bufs[src][...] = y
    o_ref[...] = bufs[src][...].astype(o_ref.dtype)


def nlayers_fc_forward(x, params, n_layers, *, compute_dtype=jnp.float32,
                       block_b=256):
    """Fused NLayersFC forward pass. x: [B, in_dim]; params: list of (w_t, b)."""
    B, in_dim = x.shape
    out_dim = params[-1][0].shape[1]
    n_linear = len(params)

    # ReLU follows every Linear except the last one (and only when n_layers > 0).
    relu_flags = tuple((n_layers > 0) and (i < n_linear - 1)
                       for i in range(n_linear))

    # Shared lane-dense feature width (multiple of 128) for all layers.
    dims = [in_dim] + [w_t.shape[1] for (w_t, _) in params]
    d_pad = _round_up(max(dims), 128)

    # Batch tiling: full sublane groups (multiple of 8), up to block_b rows/tile.
    bt = min(block_b, _round_up(B, 8))
    b_pad = _round_up(B, bt)

    # Pack zero-padded stacked weights / biases.
    W = jnp.zeros((n_linear, d_pad, d_pad), compute_dtype)
    Bv = jnp.zeros((n_linear, 1, d_pad), compute_dtype)
    for l, (w_t, b) in enumerate(params):
        di, do = w_t.shape
        W = W.at[l, :di, :do].set(w_t.astype(compute_dtype))
        Bv = Bv.at[l, 0, :do].set(jnp.reshape(b, (-1,)).astype(compute_dtype))

    x_p = jnp.zeros((b_pad, d_pad), compute_dtype)
    x_p = x_p.at[:B, :in_dim].set(x.astype(compute_dtype))

    kernel = functools.partial(_fused_mlp_kernel, relu_flags=relu_flags)
    out = pl.pallas_call(
        kernel,
        out_shape=jax.ShapeDtypeStruct((b_pad, d_pad), x.dtype),
        grid_spec=pltpu.PrefetchScalarGridSpec(
            num_scalar_prefetch=0,
            grid=(b_pad // bt,),
            in_specs=[
                pl.BlockSpec((bt, d_pad), lambda i: (i, 0)),
                pl.BlockSpec((n_linear, d_pad, d_pad), lambda i: (0, 0, 0)),
                pl.BlockSpec((n_linear, 1, d_pad), lambda i: (0, 0, 0)),
            ],
            out_specs=pl.BlockSpec((bt, d_pad), lambda i: (i, 0)),
            scratch_shapes=[
                pltpu.VMEM((bt, d_pad), jnp.float32),
                pltpu.VMEM((bt, d_pad), jnp.float32),
            ],
        ),
        compiler_params=pltpu.CompilerParams(
            dimension_semantics=("parallel",),   # shard batch tiles across TCs
        ),
    )(x_p, W, Bv)

    return out[:B, :out_dim]


def init_nlayers_fc_params(key, in_dim, out_dim, hidden_dim=1, n_layers=0,
                           dtype=jnp.float32):
    """PyTorch-style nn.Linear init. Returns [(w_t [in,out], b [1,out]), ...]."""
    if n_layers == 0:
        dims = [(in_dim, out_dim)]
    else:
        dims = [(in_dim, hidden_dim)]
        dims += [(hidden_dim, hidden_dim)] * (n_layers - 1)
        dims += [(hidden_dim, out_dim)]

    params = []
    for (d_in, d_out) in dims:
        key, kw, kb = jax.random.split(key, 3)
        bound = 1.0 / jnp.sqrt(jnp.asarray(d_in, dtype=jnp.float32))
        # U(-1/sqrt(in), 1/sqrt(in)) for both weight and bias (PyTorch default).
        w = jax.random.uniform(kw, (d_out, d_in), dtype, -bound, bound)
        b = jax.random.uniform(kb, (1, d_out), dtype, -bound, bound)
        params.append((w.T, b))  # store pre-transposed [in, out]
    return params


def nlayers_fc_reference(x, params, n_layers):
    n_linear = len(params)
    h = x
    for i, (w_t, b) in enumerate(params):
        h = h @ w_t + b
        if (n_layers > 0) and (i < n_linear - 1):
            h = jnp.maximum(h, 0.0)
    return h


if __name__ == "__main__":
    key = jax.random.PRNGKey(0)
    key_x, key_p = jax.random.split(key)

    # Small shapes consistent with the module:
    # batch=2, in_dim=32, hidden_dim=32, out_dim=16, n_layers=2
    # => Linear, ReLU, Linear, ReLU, Linear
    B, IN_DIM, HIDDEN, OUT_DIM, N_LAYERS = 2, 32, 32, 16, 2

    x = jax.random.normal(key_x, (B, IN_DIM), jnp.float32)
    params = init_nlayers_fc_params(key_p, IN_DIM, OUT_DIM, HIDDEN, N_LAYERS)
    y_ref = nlayers_fc_reference(x, params, N_LAYERS)

    # f32 path: bit-for-bit-ish vs reference.
    y_f32 = nlayers_fc_forward(x, params, N_LAYERS, compute_dtype=jnp.float32)
    y_f32 = jax.block_until_ready(y_f32)
    assert y_f32.shape == (B, OUT_DIM)
    assert jnp.allclose(y_f32, y_ref, atol=1e-5, rtol=1e-5)

    # bf16 path (v6e/v7x fast path): bf16 inputs/weights, f32 accumulate.
    y_bf16 = nlayers_fc_forward(x, params, N_LAYERS, compute_dtype=jnp.bfloat16)
    y_bf16 = jax.block_until_ready(y_bf16)
    assert y_bf16.shape == (B, OUT_DIM)
    assert y_bf16.dtype == jnp.float32
    assert jnp.allclose(y_bf16, y_ref, atol=5e-2, rtol=5e-2)

    # Also exercise the n_layers == 0 branch (single Linear, no ReLU).
    params0 = init_nlayers_fc_params(key_p, IN_DIM, OUT_DIM, HIDDEN, 0)
    y0 = jax.block_until_ready(nlayers_fc_forward(x, params0, 0))
    assert jnp.allclose(y0, nlayers_fc_reference(x, params0, 0),
                        atol=1e-5, rtol=1e-5)

    print("KERNEL_OK")
</pallas_src>

<mosaic_0001>
module attributes {stable_mosaic.version = 11 : i64} {
  func.func @_fused_mlp_kernel(%arg0: i32, %arg1: memref<8x128xf32, #tpu.memory_space<vmem>>, %arg2: memref<3x128x128xf32, #tpu.memory_space<vmem>>, %arg3: memref<3x1x128xf32, #tpu.memory_space<vmem>>, %arg4: memref<8x128xf32, #tpu.memory_space<vmem>>, %arg5: memref<8x128xf32, #tpu.memory_space<vmem>>, %arg6: memref<8x128xf32, #tpu.memory_space<vmem>>) attributes {dimension_semantics = [#tpu.dimension_semantics<parallel>], iteration_bounds = array<i64: 1>, scalar_prefetch = 0 : i64, scratch_operands = 2 : i64, tpu.core_type = #tpu.core_type<tc>, window_params = [{transform_indices = @transform_0, window_bounds = array<i64: 8, 128>}, {pipeline_mode = #tpu.pipeline_mode<synchronous>, transform_indices = @transform_1, window_bounds = array<i64: 3, 128, 128>}, {pipeline_mode = #tpu.pipeline_mode<synchronous>, transform_indices = @transform_2, window_bounds = array<i64: 3, 1, 128>}, {transform_indices = @transform_3, window_bounds = array<i64: 8, 128>}]} {
    %c0 = arith.constant 0 : index
    %c0_0 = arith.constant 0 : index
    %0 = vector.load %arg1[%c0, %c0_0] : memref<8x128xf32, #tpu.memory_space<vmem>>, vector<8x128xf32>
    %c0_1 = arith.constant 0 : index
    %c0_2 = arith.constant 0 : index
    %1 = vector.load %arg5[%c0_1, %c0_2] : memref<8x128xf32, #tpu.memory_space<vmem>>, vector<8x128xf32>
    tpu.vector_store %arg5[%c0_1, %c0_2], %0 {strides = array<i32>} : memref<8x128xf32, #tpu.memory_space<vmem>>, vector<8x128xf32>,
    %c0_3 = arith.constant 0 : index
    %c0_4 = arith.constant 0 : index
    %2 = vector.load %arg5[%c0_3, %c0_4] : memref<8x128xf32, #tpu.memory_space<vmem>>, vector<8x128xf32>
    %c0_5 = arith.constant 0 : index
    %c0_6 = arith.constant 0 : index
    %c0_7 = arith.constant 0 : index
    %3 = vector.load %arg2[%c0_5, %c0_6, %c0_7] : memref<3x128x128xf32, #tpu.memory_space<vmem>>, vector<1x128x128xf32>
    %4 = vector.shape_cast %3 : vector<1x128x128xf32> to vector<128x128xf32>
    %cst = arith.constant dense<0.000000e+00> : vector<8x128xf32>
    %5 = tpu.matmul %2, %4, %cst {dimension_numbers = #tpu.dot_dimension_numbers<[1], [0], [0], [1], [0, 0, 1, 1], [], []>} : vector<8x128xf32>, vector<128x128xf32>, vector<8x128xf32> -> vector<8x128xf32>
    %c0_8 = arith.constant 0 : index
    %c0_9 = arith.constant 0 : index
    %c0_10 = arith.constant 0 : index
    %6 = vector.load %arg3[%c0_8, %c0_9, %c0_10] : memref<3x1x128xf32, #tpu.memory_space<vmem>>, vector<1x1x128xf32>
    %7 = vector.shape_cast %6 : vector<1x1x128xf32> to vector<1x128xf32>
    %8 = vector.broadcast %7 : vector<1x128xf32> to vector<8x128xf32>
    %9 = arith.addf %5, %8 : vector<8x128xf32>
    %cst_11 = arith.constant 0.000000e+00 : f32
    %10 = vector.broadcast %cst_11 : f32 to vector<8x128xf32>
    %11 = arith.maximumf %9, %10 : vector<8x128xf32>
    %c0_12 = arith.constant 0 : index
    %c0_13 = arith.constant 0 : index
    %12 = vector.load %arg6[%c0_12, %c0_13] : memref<8x128xf32, #tpu.memory_space<vmem>>, vector<8x128xf32>
    tpu.vector_store %arg6[%c0_12, %c0_13], %11 {strides = array<i32>} : memref<8x128xf32, #tpu.memory_space<vmem>>, vector<8x128xf32>,
    %c0_14 = arith.constant 0 : index
    %c0_15 = arith.constant 0 : index
    %13 = vector.load %arg6[%c0_14, %c0_15] : memref<8x128xf32, #tpu.memory_space<vmem>>, vector<8x128xf32>
    %c1 = arith.constant 1 : index
    %c0_16 = arith.constant 0 : index
    %c0_17 = arith.constant 0 : index
    %14 = vector.load %arg2[%c1, %c0_16, %c0_17] : memref<3x128x128xf32, #tpu.memory_space<vmem>>, vector<1x128x128xf32>
    %15 = vector.shape_cast %14 : vector<1x128x128xf32> to vector<128x128xf32>
    %cst_18 = arith.constant dense<0.000000e+00> : vector<8x128xf32>
    %16 = tpu.matmul %13, %15, %cst_18 {dimension_numbers = #tpu.dot_dimension_numbers<[1], [0], [0], [1], [0, 0, 1, 1], [], []>} : vector<8x128xf32>, vector<128x128xf32>, vector<8x128xf32> -> vector<8x128xf32>
    %c1_19 = arith.constant 1 : index
    %c0_20 = arith.constant 0 : index
    %c0_21 = arith.constant 0 : index
    %17 = vector.load %arg3[%c1_19, %c0_20, %c0_21] : memref<3x1x128xf32, #tpu.memory_space<vmem>>, vector<1x1x128xf32>
    %18 = vector.shape_cast %17 : vector<1x1x128xf32> to vector<1x128xf32>
    %19 = vector.broadcast %18 : vector<1x128xf32> to vector<8x128xf32>
    %20 = arith.addf %16, %19 : vector<8x128xf32>
    %cst_22 = arith.constant 0.000000e+00 : f32
    %21 = vector.broadcast %cst_22 : f32 to vector<8x128xf32>
    %22 = arith.maximumf %20, %21 : vector<8x128xf32>
    %c0_23 = arith.constant 0 : index
    %c0_24 = arith.constant 0 : index
    %23 = vector.load %arg5[%c0_23, %c0_24] : memref<8x128xf32, #tpu.memory_space<vmem>>, vector<8x128xf32>
    tpu.vector_store %arg5[%c0_23, %c0_24], %22 {strides = array<i32>} : memref<8x128xf32, #tpu.memory_space<vmem>>, vector<8x128xf32>,
    %c0_25 = arith.constant 0 : index
    %c0_26 = arith.constant 0 : index
    %24 = vector.load %arg5[%c0_25, %c0_26] : memref<8x128xf32, #tpu.memory_space<vmem>>, vector<8x128xf32>
    %c2 = arith.constant 2 : index
    %c0_27 = arith.constant 0 : index
    %c0_28 = arith.constant 0 : index
    %25 = vector.load %arg2[%c2, %c0_27, %c0_28] : memref<3x128x128xf32, #tpu.memory_space<vmem>>, vector<1x128x128xf32>
    %26 = vector.shape_cast %25 : vector<1x128x128xf32> to vector<128x128xf32>
    %cst_29 = arith.constant dense<0.000000e+00> : vector<8x128xf32>
    %27 = tpu.matmul %24, %26, %cst_29 {dimension_numbers = #tpu.dot_dimension_numbers<[1], [0], [0], [1], [0, 0, 1, 1], [], []>} : vector<8x128xf32>, vector<128x128xf32>, vector<8x128xf32> -> vector<8x128xf32>
    %c2_30 = arith.constant 2 : index
    %c0_31 = arith.constant 0 : index
    %c0_32 = arith.constant 0 : index
    %28 = vector.load %arg3[%c2_30, %c0_31, %c0_32] : memref<3x1x128xf32, #tpu.memory_space<vmem>>, vector<1x1x128xf32>
    %29 = vector.shape_cast %28 : vector<1x1x128xf32> to vector<1x128xf32>
    %30 = vector.broadcast %29 : vector<1x128xf32> to vector<8x128xf32>
    %31 = arith.addf %27, %30 : vector<8x128xf32>
    %c0_33 = arith.constant 0 : index
    %c0_34 = arith.constant 0 : index
    %32 = vector.load %arg6[%c0_33, %c0_34] : memref<8x128xf32, #tpu.memory_space<vmem>>, vector<8x128xf32>
    tpu.vector_store %arg6[%c0_33, %c0_34], %31 {strides = array<i32>} : memref<8x128xf32, #tpu.memory_space<vmem>>, vector<8x128xf32>,
    %c0_35 = arith.constant 0 : index
    %c0_36 = arith.constant 0 : index
    %33 = vector.load %arg6[%c0_35, %c0_36] : memref<8x128xf32, #tpu.memory_space<vmem>>, vector<8x128xf32>
    %c0_37 = arith.constant 0 : index
    %c0_38 = arith.constant 0 : index
    %34 = vector.load %arg4[%c0_37, %c0_38] : memref<8x128xf32, #tpu.memory_space<vmem>>, vector<8x128xf32>
    tpu.vector_store %arg4[%c0_37, %c0_38], %33 {strides = array<i32>} : memref<8x128xf32, #tpu.memory_space<vmem>>, vector<8x128xf32>,
    return
  }
  func.func @transform_0(%arg0: i32) -> (i32, i32) {
    %c0_i32 = arith.constant 0 : i32
    %c0_i32_0 = arith.constant 0 : i32
    return %arg0, %c0_i32 : i32, i32
  }
  func.func @transform_1(%arg0: i32) -> (i32, i32, i32) {
    %c0_i32 = arith.constant 0 : i32
    %c0_i32_0 = arith.constant 0 : i32
    %c0_i32_1 = arith.constant 0 : i32
    %c0_i32_2 = arith.constant 0 : i32
    return %c0_i32, %c0_i32_0, %c0_i32_1 : i32, i32, i32
  }
  func.func @transform_2(%arg0: i32) -> (i32, i32, i32) {
    %c0_i32 = arith.constant 0 : i32
    %c0_i32_0 = arith.constant 0 : i32
    %c0_i32_1 = arith.constant 0 : i32
    %c0_i32_2 = arith.constant 0 : i32
    return %c0_i32, %c0_i32_0, %c0_i32_1 : i32, i32, i32
  }
  func.func @transform_3(%arg0: i32) -> (i32, i32) {
    %c0_i32 = arith.constant 0 : i32
    %c0_i32_0 = arith.constant 0 : i32
    return %arg0, %c0_i32 : i32, i32
  }
}

</mosaic_0001>

<bundles_post_ra>
// kernel: tpu_custom_call.1
= control target key start
LH: loop header
LB: loop body
LE: loop exit
PB: predicated region body
PF: predicated region fallthrough
CT: control target
= control target key end

     0   :  { %8 = vsyncpa [#allocation5], 0  ;;  %s367_s0 = inlined_call_operand.hbm [shape: f32[8,128], index: 0, kind: input, shape index: {}]   ;;  %s368_s1 = inlined_call_operand.hbm [shape: f32[3,128,128], index: 1, kind: input, shape index: {}]   ;;  %s369_s2 = inlined_call_operand.hbm [shape: f32[3,1,128], index: 2, kind: input, shape index: {}]   ;;  %s370_s3 = inlined_call_operand.hbm [shape: f32[8,128], index: 3, kind: output, shape index: {}]  }
   0x1   :  { %9 = vsyncpa [#allocation8], 0  ;;  %s26_s14 = sshll.u32 %s368_s1, 4  ;;  %s27_s14 = int_to_ptr.hbm [resolvable:$true] %s26_s14 }
   0x2   :  { %10 = vsyncpa [#allocation6], 0  ;;  %s327_s15 = smov [#allocation7]   ;;  %s16_s19 = sshll.u32 %s367_s0, 4  ;;  %s17_s19 = int_to_ptr.hbm [resolvable:$true] %s16_s19 }
   0x3   :  { %s28_s16 = sshll.u32 %s327_s15, 4  ;;  %s328_s20 = smov 128   ;;  %s29_s16 = int_to_ptr.vmem [resolvable:$true] %s28_s16 }
   0x4   :  { %s329_s21 = smov 8   ;;  %s330_s22 = smov [#allocation4]  }
   0x5   :  { %34 = dma.hbm_to_vmem [thread:$0]  %s27_s14, 6144, %s29_s16, [#allocation8], %s328_s20, %s328_s20, %s329_s21  }
   0x6   :  { %s18_s23 = sshll.u32 %s330_s22, 4  ;;  %s39_s26 = sshll.u32 %s369_s2, 4  ;;  %s19_s23 = int_to_ptr.vmem [resolvable:$true] %s18_s23  ;;  %s40_s26 = int_to_ptr.hbm [resolvable:$true] %s39_s26 }
   0x7   :  { %21 = dma.hbm_to_vmem [thread:$0]  %s17_s19, 128, %s19_s23, [#allocation5]  }
   0x8   :  { %s331_s1 = smov [#allocation9]   ;;  %s332_s28 = smov 16  }
   0x9   :  { %s41_s27 = sshll.u32 %s331_s1, 4  ;;  %s333_s29 = smov 1   ;;  %s42_s27 = int_to_ptr.vmem [resolvable:$true] %s41_s27 }
   0xa   :  { %47 = dma.hbm_to_vmem [thread:$0]  %s40_s26, 48, %s42_s27, [#allocation8], %s332_s28, %s332_s28, %s333_s29  }
   0xb   :  { %321 = dma.done.wait [#allocation5], 128  }
   0xc   :  { %322 = vsyncadd [#allocation5], 4294967168 }
   0xd   :  { %323 = dma.done.wait [#allocation8], 6192  }
   0xe   :  { %324 = vsyncadd [#allocation8], 4294961104  ;;  %v78_v0 = vld [vmem:[#allocation7 + $0x78] sm:$0xff]  ;;  %v77_v1 = vld [vmem:[#allocation7 + $0x70] sm:$0xff]  ;;  %s334_s0 = smov [#allocation10]   ;;  %s203_s5 = sshll.u32 %s370_s3, 4  ;;  %s204_s5 = int_to_ptr.hbm [resolvable:$true] %s203_s5 }
   0xf   :  { %83 = vmatpush.msra.mxu0 %v78_v0  ;;  %v76_v2 = vld [vmem:[#allocation7 + $0x68] sm:$0xff]  ;;  %v75_v3 = vld [vmem:[#allocation7 + $0x60] sm:$0xff]  ;;  %v122_v4 = vld [vmem:[#allocation7 + $0xf8] sm:$0xff]  ;;  %s201_s2 = sshll.u32 %s334_s0, 4  ;;  %s202_s2 = int_to_ptr.vmem [resolvable:$true] %s201_s2 }
  0x10   :  { %v74_v5 = vld [vmem:[#allocation7 + $0x58] sm:$0xff]  ;;  %128 = vmatpush.msra.mxu1 %v122_v4  ;;  %v121_v6 = vld [vmem:[#allocation7 + $0xf0] sm:$0xff]  ;;  %v120_v7 = vld [vmem:[#allocation7 + $0xe8] sm:$0xff] }
  0x11   :  { %84 = vmatpush.msra.mxu0 %v77_v1  ;;  %v73_v8 = vld [vmem:[#allocation7 + $0x50] sm:$0xff]  ;;  %v119_v9 = vld [vmem:[#allocation7 + $0xe0] sm:$0xff]  ;;  %v72_v10 = vld [vmem:[#allocation7 + $0x48] sm:$0xff] }
  0x12   :  { %129 = vmatpush.msra.mxu1 %v121_v6  ;;  %v118_v11 = vld [vmem:[#allocation7 + $0xd8] sm:$0xff]  ;;  %v71_v12 = vld [vmem:[#allocation7 + $0x40] sm:$0xff]  ;;  %v117_v13 = vld [vmem:[#allocation7 + $0xd0] sm:$0xff] }
  0x13   :  { %85 = vmatpush.msra.mxu0 %v76_v2  ;;  %v70_v14 = vld [vmem:[#allocation7 + $0x38] sm:$0xff]  ;;  %v116_v15 = vld [vmem:[#allocation7 + $0xc8] sm:$0xff]  ;;  %v69_v16 = vld [vmem:[#allocation7 + $0x30] sm:$0xff] }
  0x14   :  { %130 = vmatpush.msra.mxu1 %v120_v7  ;;  %v115_v17 = vld [vmem:[#allocation7 + $0xc0] sm:$0xff]  ;;  %v68_v18 = vld [vmem:[#allocation7 + $0x28] sm:$0xff]  ;;  %v114_v19 = vld [vmem:[#allocation7 + $0xb8] sm:$0xff] }
  0x15   :  { %86 = vmatpush.msra.mxu0 %v75_v3  ;;  %v67_v20 = vld [vmem:[#allocation7 + $0x20] sm:$0xff]  ;;  %v113_v21 = vld [vmem:[#allocation7 + $0xb0] sm:$0xff]  ;;  %v66_v22 = vld [vmem:[#allocation7 + $0x18] sm:$0xff] }
  0x16   :  { %131 = vmatpush.msra.mxu1 %v119_v9  ;;  %v112_v23 = vld [vmem:[#allocation7 + $0xa8] sm:$0xff]  ;;  %v65_v24 = vld [vmem:[#allocation7 + $0x10] sm:$0xff]  ;;  %v111_v25 = vld [vmem:[#allocation7 + $0xa0] sm:$0xff] }
  0x17   :  { %87 = vmatpush.msra.mxu0 %v74_v5  ;;  %v64_v26 = vld [vmem:[#allocation7 + $0x8] sm:$0xff]  ;;  %v110_v27 = vld [vmem:[#allocation7 + $0x98] sm:$0xff]  ;;  %v63_v28 = vld [vmem:[#allocation7] sm:$0xff] }
  0x18   :  { %132 = vmatpush.msra.mxu1 %v118_v11  ;;  %v60_v29 = vld [vmem:[#allocation4] sm:$0xff]  ;;  %v109_v30 = vld [vmem:[#allocation7 + $0x90] sm:$0xff]  ;;  %v108_v31 = vld [vmem:[#allocation7 + $0x88] sm:$0xff] }
  0x19   :  { %88 = vmatpush.msra.mxu0 %v73_v8  ;;  %v107_v32 = vld [vmem:[#allocation7 + $0x80] sm:$0xff]  ;;  %v167_v33 = vld [vmem:[#allocation7 + $0x178] sm:$0xff]  ;;  %v166_v34 = vld [vmem:[#allocation7 + $0x170] sm:$0xff] }
  0x1a   :  { %133 = vmatpush.msra.mxu1 %v117_v13  ;;  %173 = vmatpush.msra.mxu2 %v167_v33  ;;  %v165_v35 = vld [vmem:[#allocation7 + $0x168] sm:$0xff]  ;;  %v164_v36 = vld [vmem:[#allocation7 + $0x160] sm:$0xff]  ;;  %v163_v37 = vld [vmem:[#allocation7 + $0x158] sm:$0xff] }
  0x1b   :  { %89 = vmatpush.msra.mxu0 %v72_v10  ;;  %v162_v38 = vld [vmem:[#allocation7 + $0x150] sm:$0xff]  ;;  %v161_v39 = vld [vmem:[#allocation7 + $0x148] sm:$0xff]  ;;  %v160_v40 = vld [vmem:[#allocation7 + $0x140] sm:$0xff] }
  0x1c   :  { %134 = vmatpush.msra.mxu1 %v116_v15  ;;  %174 = vmatpush.msra.mxu2 %v166_v34  ;;  %v159_v41 = vld [vmem:[#allocation7 + $0x138] sm:$0xff]  ;;  %v158_v42 = vld [vmem:[#allocation7 + $0x130] sm:$0xff]  ;;  %v157_v43 = vld [vmem:[#allocation7 + $0x128] sm:$0xff] }
  0x1d   :  { %90 = vmatpush.msra.mxu0 %v71_v12  ;;  %v156_v44 = vld [vmem:[#allocation7 + $0x120] sm:$0xff]  ;;  %v155_v45 = vld [vmem:[#allocation7 + $0x118] sm:$0xff]  ;;  %v154_v50 = vld [vmem:[#allocation7 + $0x110] sm:$0xff] }
  0x1e   :  { %135 = vmatpush.msra.mxu1 %v115_v17  ;;  %175 = vmatpush.msra.mxu2 %v165_v35  ;;  %v222_v46 = vld [vmem:[#allocation9] ss:$0 sm:$0xff]  ;;  %v153_v51 = vld [vmem:[#allocation7 + $0x108] sm:$0xff]  ;;  %v223_v53 = vld [vmem:[#allocation9 + $0x1] ss:$0 sm:$0xff] }
  0x1f   :  { %91 = vmatpush.msra.mxu0 %v70_v14  ;;  %v152_v52 = vld [vmem:[#allocation7 + $0x100] sm:$0xff] }
  0x20   :  { %136 = vmatpush.msra.mxu1 %v114_v19  ;;  %176 = vmatpush.msra.mxu2 %v164_v36  ;;  %v224_v57 = vld [vmem:[#allocation9 + $0x2] ss:$0 sm:$0xff] }
  0x21   :  { %92 = vmatpush.msra.mxu0 %v69_v16 }
  0x22   :  { %137 = vmatpush.msra.mxu1 %v113_v21  ;;  %177 = vmatpush.msra.mxu2 %v163_v37 }
  0x23   :  { %93 = vmatpush.msra.mxu0 %v68_v18 }
  0x24   :  { %138 = vmatpush.msra.mxu1 %v112_v23  ;;  %178 = vmatpush.msra.mxu2 %v162_v38 }
  0x25   :  { %94 = vmatpush.msra.mxu0 %v67_v20 }
  0x26   :  { %139 = vmatpush.msra.mxu1 %v111_v25  ;;  %179 = vmatpush.msra.mxu2 %v161_v39 }
  0x27   :  { %95 = vmatpush.msra.mxu0 %v66_v22 }
  0x28   :  { %140 = vmatpush.msra.mxu1 %v110_v27  ;;  %180 = vmatpush.msra.mxu2 %v160_v40 }
  0x29   :  { %96 = vmatpush.msra.mxu0 %v65_v24 }
  0x2a   :  { %141 = vmatpush.msra.mxu1 %v109_v30  ;;  %181 = vmatpush.msra.mxu2 %v159_v41 }
  0x2b   :  { %97 = vmatpush.msra.mxu0 %v64_v26 }
  0x2c   :  { %142 = vmatpush.msra.mxu1 %v108_v31  ;;  %182 = vmatpush.msra.mxu2 %v158_v42 }
  0x2d   :  { %98 = vmatpush.msra.mxu0 %v63_v28 }
  0x2e   :  { %99 = vmatmul.f32.vlgmr.msra.gmra.mxu0 %v60_v29  ;;  %143 = vmatpush.msra.mxu1 %v107_v32 }
  0x2f   :  { %183 = vmatpush.msra.mxu2 %v157_v43 }
  0x31   :  { %184 = vmatpush.msra.mxu2 %v156_v44 }
  0x33   :  { %185 = vmatpush.msra.mxu2 %v155_v45 }
  0x35   :  { %186 = vmatpush.msra.mxu2 %v154_v50 }
  0x37   :  { %187 = vmatpush.msra.mxu2 %v153_v51 }
  0x39   :  { %188 = vmatpush.msra.mxu2 %v152_v52 }
  0xab   :  { %v100_v47 = vpop.f32.mrf.mxu0 }
  0xac   :  { %v101_v48 = vadd.f32 %v222_v46, %v100_v47 }
  0xae   :  { %v103_v49 = vmax.f32 %v101_v48, 0.0 }
  0xb0   :  { %144 = vmatmul.f32.vlgmr.msra.gmra.mxu1 %v103_v49 }
 0x12d   :  { %v145_v54 = vpop.f32.mrf.mxu1 }
 0x12e   :  { %v146_v55 = vadd.f32 %v223_v53, %v145_v54 }
 0x130   :  { %v148_v56 = vmax.f32 %v146_v55, 0.0 }
 0x132   :  { %189 = vmatmul.f32.vlgmr.msra.gmra.mxu2 %v148_v56 }
 0x1b5   :  { %v190_v58 = vpop.f32.mrf.mxu2 }
 0x1b6   :  { %v191_v59 = vadd.f32 %v224_v57, %v190_v58 }
 0x1b8   :  { %195 = vst [vmem:[#allocation10] sm:$0xff] %v191_v59 }
 0x1b9   :  { %206 = dma.vmem_to_hbm [thread:$0]  %s202_s2, 128, %s204_s5, [#allocation6]  }
 0x1ba   :  { %325 = dma.done.wait [#allocation6], 128  }
 0x1bb   :  { %326 = vsyncadd [#allocation6], 4294967168 }
 0x1bc   :  { %211 = vsyncpa [#allocation5], 1 }
 0x1bd   :  { %212 = vsyncpa [#allocation8], 1 }
 0x1be   :  { %213 = vsyncpa [#allocation6], 1 }

</bundles_post_ra>
